<compile_context>
chip_gen: v7x
topology: tpu7x:2x2x1
jax: 0.10.0
libtpu: 0.0.40
codegen_flags: <defaults>
</compile_context>

<pallas_src>
import numpy as np
import jax
import jax.numpy as jnp
from jax.experimental import pallas as pl
from jax.experimental.pallas import tpu as pltpu


def _pool_weights(offset: int, size: int, side: int, cut_size: int) -> np.ndarray:
    """Averaging matrix (cut_size, side): adaptive_avg_pool1d of x[offset:offset+size]."""
    w = np.zeros((cut_size, side), dtype=np.float32)
    for i in range(cut_size):
        start = (i * size) // cut_size
        end = -((-(i + 1) * size) // cut_size)          # ceil((i+1)*size/cut_size)
        w[i, offset + start: offset + end] = 1.0 / float(end - start)
    return w


def _pick_group(nc: int, w: int, h: int, cs: int) -> int:
    """Largest divisor G of N*C whose blocks stay layout-legal and VMEM-friendly."""
    budget = 8 * 1024 * 1024                            # bytes per buffer (bf16)
    legal = [g for g in range(nc, 0, -1)
             if nc % g == 0 and (g == nc or (g * w) % 128 == 0)]
    for g in legal:
        if h * g * w * 2 <= budget and (g * w) * (g * cs) * 2 <= budget:
            return g
    return legal[-1]


def _cutout_kernel(x_ref, wy_ref, wxbd_ref, out_ref):
    # x_ref    : (H, G*W)         bf16  -- G (n,c) planes flattened into lanes
    # wy_ref   : (1, cs, H)       bf16  -- row-averaging matrix of cutout k
    # wxbd_ref : (1, G*W, G*cs)   bf16  -- block-diag col-averaging (lane-dense)
    # out_ref  : (1, 1, cs, G*cs) f32   -- lane-dense store
    t = jnp.dot(wy_ref[0], x_ref[...], preferred_element_type=jnp.float32)
    out = jnp.dot(t.astype(jnp.bfloat16), wxbd_ref[0],
                  preferred_element_type=jnp.float32)
    out_ref[0, 0] = out


def make_cutouts(x: jax.Array, cut_size: int, cutn: int, cut_pow: float = 1.0,
                 key=None):
    """Pallas implementation of MakeCutouts.forward.

    x: (N, C, H, W) float32.  Returns ((cutn * N, C, cut_size, cut_size), (wy, wx)).
    """
    if key is None:
        key = jax.random.PRNGKey(0)
    N, C, sideY, sideX = x.shape
    cs = cut_size
    max_size = min(sideX, sideY)
    min_size = min(sideX, sideY, cs)

    # ---- host glue: one batched RNG draw (single device sync) --------------
    u = np.asarray(jax.random.uniform(key, (3, cutn), dtype=jnp.float32))
    sizes = (u[0] ** cut_pow * (max_size - min_size) + min_size).astype(np.int64)
    offx = np.minimum((u[1] * (sideX - sizes + 1)).astype(np.int64), sideX - sizes)
    offy = np.minimum((u[2] * (sideY - sizes + 1)).astype(np.int64), sideY - sizes)

    wy_np = np.zeros((cutn, cs, sideY), np.float32)     # lane-dense (last dim H)
    wx_np = np.zeros((cutn, cs, sideX), np.float32)     # lane-dense (last dim W)
    for k in range(cutn):
        wy_np[k] = _pool_weights(int(offy[k]), int(sizes[k]), sideY, cs)
        wx_np[k] = _pool_weights(int(offx[k]), int(sizes[k]), sideX, cs)

    NC = N * C
    G = _pick_group(NC, sideX, sideY, cs)
    num_groups = NC // G

    # Block-diagonal column-averaging operator so stage 2 is one dense matmul
    # with a lane-dense (G*cs) output.
    wxbd_np = np.zeros((cutn, G * sideX, G * cs), np.float32)
    for k in range(cutn):
        for g in range(G):
            wxbd_np[k, g * sideX:(g + 1) * sideX, g * cs:(g + 1) * cs] = wx_np[k].T

    wy = jnp.asarray(wy_np, dtype=jnp.bfloat16)
    wxbd = jnp.asarray(wxbd_np, dtype=jnp.bfloat16)

    # x (N,C,H,W) -> (H, N*C*W): one wrapper-side transpose/reshape so each
    # pooling stage is a single wide MXU matmul per cutout/group.
    xf = jnp.transpose(x.astype(jnp.bfloat16), (2, 0, 1, 3)).reshape(sideY, NC * sideX)

    # ---- compiler hints ------------------------------------------------------
    blk_bytes = 2 * (sideY * G * sideX * 2 + cs * sideY * 2
                     + G * sideX * G * cs * 2 + cs * G * cs * 4)
    vmem_limit = int(min(128 * 2 ** 20, max(32 * 2 ** 20, 4 * blk_bytes)))
    flops = 2 * cutn * num_groups * (cs * sideY * G * sideX + cs * G * sideX * G * cs)
    bytes_accessed = int(xf.size * 2
                         + num_groups * (wy.size * 2 + wxbd.size * 2)
                         + num_groups * cutn * cs * G * cs * 4)

    out = pl.pallas_call(
        _cutout_kernel,
        out_shape=jax.ShapeDtypeStruct((num_groups, cutn, cs, G * cs), jnp.float32),
        grid_spec=pltpu.PrefetchScalarGridSpec(
            num_scalar_prefetch=0,
            grid=(num_groups, cutn),            # inner axis = cutn => x block reused
            in_specs=[
                pl.BlockSpec((sideY, G * sideX), lambda gq, k: (0, gq)),
                pl.BlockSpec((1, cs, sideY), lambda gq, k: (k, 0, 0)),
                pl.BlockSpec((1, G * sideX, G * cs), lambda gq, k: (k, 0, 0)),
            ],
            out_specs=pl.BlockSpec((1, 1, cs, G * cs),
                                   lambda gq, k: (gq, k, 0, 0)),
        ),
        compiler_params=pltpu.CompilerParams(
            dimension_semantics=("parallel", "parallel"),
            vmem_limit_bytes=vmem_limit),
        cost_estimate=pl.CostEstimate(flops=flops, transcendentals=0,
                                      bytes_accessed=bytes_accessed),
    )(xf, wy, wxbd)

    # (num_groups, cutn, cs, G*cs) -> (cutn*N, C, cs, cs)  [torch.cat order]
    o = out.reshape(num_groups, cutn, cs, G, cs)
    o = jnp.transpose(o, (1, 0, 3, 2, 4))               # (cutn, groups, G, cs, cs)
    o = o.reshape(cutn, NC, cs, cs).reshape(cutn * N, C, cs, cs)
    return o, (wy_np, wx_np)


def _reference(x_np, wy_np, wx_np):
    """f32 reference: crop + adaptive pool via the same averaging matrices."""
    cutn, cs, _ = wy_np.shape
    N, C, _, _ = x_np.shape
    out = np.zeros((cutn, N, C, cs, cs), np.float32)
    for k in range(cutn):
        for n in range(N):
            for c in range(C):
                out[k, n, c] = wy_np[k] @ x_np[n, c] @ wx_np[k].T
    return out.reshape(cutn * N, C, cs, cs)


if __name__ == "__main__":
    cut_size, cutn, cut_pow = 8, 4, 1.0
    N, C, H, W = 2, 4, 16, 16

    key = jax.random.PRNGKey(0)
    kx, krand = jax.random.split(key)
    x = jax.random.normal(kx, (N, C, H, W), dtype=jnp.float32)

    y, (wy_np, wx_np) = make_cutouts(x, cut_size, cutn, cut_pow, key=krand)
    y = jax.block_until_ready(y)

    assert y.shape == (cutn * N, C, cut_size, cut_size), y.shape
    ref = _reference(np.asarray(x), wy_np, wx_np)
    # bf16 MXU inputs (f32 accumulation) vs pure-f32 reference -> relaxed tol.
    np.testing.assert_allclose(np.asarray(y), ref, rtol=5e-2, atol=5e-2)
    print("KERNEL_OK")
</pallas_src>

<mosaic_0001>
module attributes {stable_mosaic.version = 11 : i64} {
  func.func @_cutout_kernel(%arg0: i32, %arg1: i32, %arg2: memref<16x128xbf16, #tpu.memory_space<vmem>>, %arg3: memref<1x8x16xbf16, #tpu.memory_space<vmem>>, %arg4: memref<1x128x64xbf16, #tpu.memory_space<vmem>>, %arg5: memref<1x1x8x64xf32, #tpu.memory_space<vmem>>) attributes {dimension_semantics = [#tpu.dimension_semantics<parallel>, #tpu.dimension_semantics<parallel>], iteration_bounds = array<i64: 1, 4>, scalar_prefetch = 0 : i64, scratch_operands = 0 : i64, tpu.core_type = #tpu.core_type<tc>, window_params = [{transform_indices = @transform_0, window_bounds = array<i64: 16, 128>}, {transform_indices = @transform_1, window_bounds = array<i64: 1, 8, 16>}, {transform_indices = @transform_2, window_bounds = array<i64: 1, 128, 64>}, {transform_indices = @transform_3, window_bounds = array<i64: 1, 1, 8, 64>}]} {
    %c0 = arith.constant 0 : index
    %c0_0 = arith.constant 0 : index
    %c0_1 = arith.constant 0 : index
    %0 = vector.load %arg3[%c0, %c0_0, %c0_1] : memref<1x8x16xbf16, #tpu.memory_space<vmem>>, vector<1x8x16xbf16>
    %1 = vector.shape_cast %0 : vector<1x8x16xbf16> to vector<8x16xbf16>
    %c0_2 = arith.constant 0 : index
    %c0_3 = arith.constant 0 : index
    %2 = vector.load %arg2[%c0_2, %c0_3] : memref<16x128xbf16, #tpu.memory_space<vmem>>, vector<16x128xbf16>
    %cst = arith.constant dense<0.000000e+00> : vector<8x128xf32>
    %3 = tpu.matmul %1, %2, %cst {dimension_numbers = #tpu.dot_dimension_numbers<[1], [0], [0], [1], [0, 0, 1, 1], [], []>} : vector<8x16xbf16>, vector<16x128xbf16>, vector<8x128xf32> -> vector<8x128xf32>
    %4 = arith.truncf %3 : vector<8x128xf32> to vector<8x128xbf16>
    %c0_4 = arith.constant 0 : index
    %c0_5 = arith.constant 0 : index
    %c0_6 = arith.constant 0 : index
    %5 = vector.load %arg4[%c0_4, %c0_5, %c0_6] : memref<1x128x64xbf16, #tpu.memory_space<vmem>>, vector<1x128x64xbf16>
    %6 = vector.shape_cast %5 : vector<1x128x64xbf16> to vector<128x64xbf16>
    %cst_7 = arith.constant dense<0.000000e+00> : vector<8x64xf32>
    %7 = tpu.matmul %4, %6, %cst_7 {dimension_numbers = #tpu.dot_dimension_numbers<[1], [0], [0], [1], [0, 0, 1, 1], [], []>} : vector<8x128xbf16>, vector<128x64xbf16>, vector<8x64xf32> -> vector<8x64xf32>
    %c0_8 = arith.constant 0 : index
    %c0_9 = arith.constant 0 : index
    %c0_10 = arith.constant 0 : index
    %c0_11 = arith.constant 0 : index
    %8 = vector.load %arg5[%c0_8, %c0_9, %c0_10, %c0_11] : memref<1x1x8x64xf32, #tpu.memory_space<vmem>>, vector<1x1x8x64xf32>
    %9 = vector.shape_cast %8 : vector<1x1x8x64xf32> to vector<8x64xf32>
    %10 = vector.shape_cast %7 : vector<8x64xf32> to vector<1x1x8x64xf32>
    tpu.vector_store %arg5[%c0_8, %c0_9, %c0_10, %c0_11], %10 {strides = array<i32>} : memref<1x1x8x64xf32, #tpu.memory_space<vmem>>, vector<1x1x8x64xf32>,
    return
  }
  func.func @transform_0(%arg0: i32, %arg1: i32) -> (i32, i32) {
    %c0_i32 = arith.constant 0 : i32
    %c0_i32_0 = arith.constant 0 : i32
    return %c0_i32, %arg0 : i32, i32
  }
  func.func @transform_1(%arg0: i32, %arg1: i32) -> (i32, i32, i32) {
    %c0_i32 = arith.constant 0 : i32
    %c0_i32_0 = arith.constant 0 : i32
    %c0_i32_1 = arith.constant 0 : i32
    return %arg1, %c0_i32, %c0_i32_0 : i32, i32, i32
  }
  func.func @transform_2(%arg0: i32, %arg1: i32) -> (i32, i32, i32) {
    %c0_i32 = arith.constant 0 : i32
    %c0_i32_0 = arith.constant 0 : i32
    %c0_i32_1 = arith.constant 0 : i32
    return %arg1, %c0_i32, %c0_i32_0 : i32, i32, i32
  }
  func.func @transform_3(%arg0: i32, %arg1: i32) -> (i32, i32, i32, i32) {
    %c0_i32 = arith.constant 0 : i32
    %c0_i32_0 = arith.constant 0 : i32
    %c0_i32_1 = arith.constant 0 : i32
    return %arg0, %arg1, %c0_i32, %c0_i32_0 : i32, i32, i32, i32
  }
}

</mosaic_0001>

<bundles_post_ra>
// kernel: tpu_custom_call.1
= control target key start
LH: loop header
LB: loop body
LE: loop exit
PB: predicated region body
PF: predicated region fallthrough
CT: control target
= control target key end

     0   :  { %8 = vsyncpa [#allocation3], 0  ;;  %s839_s0 = inlined_call_operand.vmem [shape: bf16[16,128], index: 0, kind: input, shape index: {}]   ;;  %s840_s1 = inlined_call_operand.vmem [shape: bf16[4,8,16], index: 1, kind: input, shape index: {}]   ;;  %s841_s2 = inlined_call_operand.vmem [shape: bf16[4,128,64], index: 2, kind: input, shape index: {}]   ;;  %s842_s3 = inlined_call_operand.hbm [shape: f32[1,4,8,64], index: 3, kind: output, shape index: {}]  }
   0x1   :  { %10 = vsyncpa [#allocation3 + $0x1], 0  ;;  %s721_s12 = smov 0   ;;  %s723_s13 = smov 0  }
   0x2   :  { %s725_s14 = smov 0   ;;  %s727_s15 = smov 0  }
   0x3   :  { %s729_s16 = smov 0   ;;  %s731_s17 = smov 0  }
   0x4 LB: > { %s490_s18 = sadd.s32 4294967295, %s696_s17   ;;  %s491_s19 = sadd.s32 4294967294, %s696_s17   ;;  %s696_s17 = sphi %s731_s17, %s16_s17   ;;  %s692_s16 = sphi %s729_s16, %s849_s16   ;;  %s688_s15 = sphi %s727_s15, %s848_s15   ;;  %s684_s14 = sphi %s725_s14, %s847_s14   ;;  %s680_s13 = sphi %s723_s13, %s846_s13   ;;  %s676_s12 = sphi %s721_s12, %s845_s12  }
   0x5   : > { %s25_s20 = sadd.s32 1, %s692_s16  ;;  %s115_s21 = sadd.s32 1, %s684_s14 }
   0x6   : > { %p26_p0 = scmp.ge.s32.totalorder %s25_s20, 4  ;;  %p125_p1 = scmp.ne.s32.totalorder %s684_s14, %s680_s13 }
   0x7   : > { %p126_p2 = scmp.eq.s32.totalorder %s490_s18, 3  ;;  %p131_p3 = scmp.ne.s32.totalorder %s680_s13, %s676_s12 }
   0x8   : > { %s851_s20 = smov (%p26_p0, %s25_s20), 0  ;;  %p132_p5 = scmp.eq.s32.totalorder %s491_s19, 3 }
   0x9   : > { %p761_p4 = por %p126_p2, %p125_p1  ;;  %s111_s23 = ssub.s32 %s692_s16, %s851_s20 }
   0xa   : > { %p495_p6 = scmp.ge.s32.totalorder %s696_s17, 1  ;;  %p113_p7 = scmp.eq.s32.totalorder %s111_s23, 0 }
   0xb   : > { %p768_p8 = por %p132_p5, %p131_p3  ;;  %p172_p9 = scmp.lt.s32.totalorder %s696_s17, 5 }
   0xc   : > { %s774_s25 = scalar_select %p113_p7, %s684_s14, %s115_s21  }
   0xd   : > { %p173_p10 = pnand %p495_p6, %p172_p9 }
   0xe   : > { %v609_v0 = vld [vmem:[%s839_s0] sm:$0xff] (!%p173_p10)   ;;  %v698_v1 = vmov (!%p173_p10), 0.0   ;;  %p208_p11 = scmp.lt.s32.totalorder (!%p173_p10), %s688_s15, 3  ;;  %vm699_vm0 = vmmov (!%p173_p10), 0   ;;  %vm227_vm1 = vcmask (!%p173_p10), 130048   ;;  %s201_s10 = sand.u32 (!%p173_p10), 1, %s680_s13  }
   0xf   : > { %176 = sbr.rel (%p173_p10) target bundleno = 468 (0x1d4), region = 32  ;;  %526 = vmatprep.subr.bf16.mxu0 (!%p173_p10), %v698_v1  ;;  %532 = vmatprep.subr.bf16.mxu1 (!%p173_p10), %v698_v1  ;;  %s496_s11 = sshll.u32 (!%p173_p10), %s201_s10, 3  ;;  %vm376_vm2 = vcmask (!%p173_p10), 523264  }
  0x10   : > { %527 = vmatpush3.bf16.msra.mxu0 (!%p173_p10), %v609_v0  ;;  %528 = vmatprep.mubr.msk.bf16.mxu0 (!%p173_p10), %vm699_vm0, %v698_v1  ;;  %s511_s18 = sshll.u32 (!%p173_p10), %s688_s15, 7  ;;  %s203_s19 = scalar_lea.vmem (!%p173_p10), [#allocation2], %s496_s11 }
  0x11   : > { %548 = vmatprep.mubr.msk.bf16.mxu1 (!%p173_p10), %vm699_vm0, %v698_v1  ;;  %s394_s21 = sshll.u32 (!%p173_p10), %s203_s19, 4  ;;  %s792_s27 = scalar_lea.hbm (!%p173_p10), %s842_s3, %s511_s18  ;;  %s794_s21 = int_to_ptr.vmem [resolvable:$true] %s394_s21 }
  0x16   : > { %s209_s28 = scalar_select %p208_p11, %s688_s15, 3 }
  0x17   : > { %s700_s15 = smov [#allocation2]  }
  0x18   : > { %s497_s29 = sshll.u32 %s209_s28, 2  ;;  %s514_s30 = sshll.u32 %s209_s28, 6 }
  0x19   : > { %s211_s6 = scalar_lea.vmem %s840_s1, %s497_s29  ;;  %s216_s9 = scalar_lea.vmem %s841_s2, %s514_s30 }
  0x1a   : > { %v218_v2 = vld [vmem:[%s211_s6] sm:$0xf]  ;;  %v611_v4 = vld [vmem:[%s216_s9 + $0x8] sm:$0xff]   ;;  %v612_v5 = vld [vmem:[%s216_s9 + $0x10] sm:$0xff]   ;;  %s379_s28 = scalar_lea.sflag [#allocation3], %s201_s10  ;;  %s618_s29 = scalar_lea.vmem %s794_s21, 128 }
  0x1b   : > { %529 = vmatmul.mubr.msk.bf16.vlgmr.msra.gmra.mrb[0].mxu0 %vm227_vm1, %v218_v2  ;;  %v610_v3 = vld [vmem:[%s216_s9] sm:$0xff]   ;;  %v613_v6 = vld [vmem:[%s216_s9 + $0x18] sm:$0xff]   ;;  %v615_v8 = vld [vmem:[%s216_s9 + $0x28] sm:$0xff]   ;;  %p619_p12 = scmp.ne.s32.totalorder %s794_s21, %s618_s29  ;;  %s622_s30 = sshll.u32 %s700_s15, 4  ;;  %s623_s30 = int_to_ptr.vmem [resolvable:$false] %s622_s30 }
  0x1c   : > { %533 = vmatpush3.bf16.msra.mxu1 %v610_v3  ;;  %v614_v7 = vld [vmem:[%s216_s9 + $0x20] sm:$0xff]   ;;  %v616_v9 = vld [vmem:[%s216_s9 + $0x30] sm:$0xff]   ;;  %v617_v10 = vld [vmem:[%s216_s9 + $0x38] sm:$0xff]   ;;  %s624_s4 = scalar_lea.vmem %s623_s30, 256  ;;  %p625_p1 = scmp.lt.s32.totalorder %s794_s21, %s623_s30 }
  0x1d   : > { %534 = vmatprep.subr.bf16.mxu1 %v698_v1  ;;  %p620_p13 = pnand %p619_p12, %p761_p4  ;;  %p626_p2 = scmp.lt.s32.totalorder %s624_s4, %s618_s29 }
  0x1f   : > { %p621_p0 = pneg %p620_p13  ;;  %p627_p3 = por %p626_p2, %p625_p1 }
  0x20   : > { %535 = vmatpush3.bf16.msra.mxu1 %v611_v4 }
  0x21   : > { %536 = vmatprep.subr.bf16.mxu1 %v698_v1  ;;  %p628_p5 = pnand %p627_p3, %p621_p0 }
  0x24   : > { %537 = vmatpush3.bf16.msra.mxu1 %v612_v5 }
  0x25   : > { %538 = vmatprep.subr.bf16.mxu1 %v698_v1 }
  0x28   : > { %539 = vmatpush3.bf16.msra.mxu1 %v613_v6 }
  0x29   : > { %540 = vmatprep.subr.bf16.mxu1 %v698_v1 }
  0x2c   : > { %541 = vmatpush3.bf16.msra.mxu1 %v614_v7 }
  0x2d   : > { %542 = vmatprep.subr.bf16.mxu1 %v698_v1 }
  0x30   : > { %543 = vmatpush3.bf16.msra.mxu1 %v615_v8 }
  0x31   : > { %544 = vmatprep.subr.bf16.mxu1 %v698_v1 }
  0x34   : > { %545 = vmatpush3.bf16.msra.mxu1 %v616_v9 }
  0x35   : > { %546 = vmatprep.subr.bf16.mxu1 %v698_v1 }
  0x38   : > { %547 = vmatpush3.bf16.msra.mxu1 %v617_v10 }
  0xee   : > { %v265_v11 = vpop.f32.mrb[0].mxu0 }
  0xef   : > { %v271_v12 = vpack.c.bf16 %v265_v11, %v265_v11  ;;  %v530_v13 = vpop.f32.mrb[1].mxu0 }
  0xf0   : > { %v268_v14 = vpop.f32.mrb[2].mxu0 }
  0xf1   : > { %v531_v15 = vpop.f32.mrb[3].mxu0  ;;  %549 = vmatmul.mubr.bf16.vlgmr.msra.gmra.mrb[0].mxu1 %v271_v12 }
 0x1c4   : > { %v370_v16 = vpop.f32.mrb[0].mxu1 }
 0x1c5   : > { %377 = vst.msk [vmem:[%s203_s19] sm:$0xff] %vm376_vm2, %v370_v16  ;;  %v550_v17 = vpop.f32.mrb[1].mxu1 }
 0x1c6   : > { %v373_v18 = vpop.f32.mrb[2].mxu1 }
 0x1c7   : > { %631 = shalt.err (!%p628_p5)
}
 0x1c8   : > { %s632_s5 = scalar_lea.hbm %s792_s27, 128  ;;  %s636_s8 = scalar_lea.hbm %s842_s3, 512 }
 0x1c9   : > { %p633_p6 = scmp.ne.s32.totalorder %s792_s27, %s632_s5  ;;  %p637_p10 = scmp.lt.u32.totalorder %s792_s27, %s842_s3 }
 0x1ca   : > { %p638_p11 = scmp.lt.u32.totalorder %s636_s8, %s632_s5  ;;  %p640_p13 = scmp.lt.u32.totalorder %s632_s5, %s792_s27 }
 0x1cb   : > { %p634_p7 = pnand %p633_p6, %p761_p4 }
 0x1cc   : > { %p639_p12 = por %p638_p11, %p637_p10 }
 0x1cd   : > { %p635_p9 = pneg %p634_p7 }
 0x1ce   : > { %p641_p0 = por %p640_p13, %p639_p12 }
 0x1d0   : > { %p642_p1 = pnand %p641_p0, %p635_p9 }
 0x1d2   : > { %645 = shalt.err (!%p642_p1)
}
 0x1d3   : > { %552 = dma.vmem_to_hbm [thread:$0]  (%p761_p4), %s794_s21, 128, %s792_s27, %s379_s28   ;;  %v551_v19 = vpop.f32.mrb[3].mxu1 }
 0x1d4 PF: > { %p558_p2 = scmp.ge.s32.totalorder %s696_s17, 2  ;;  %s406_s11 = sand.u32 1, %s676_s12  }
 0x1d5   : > { %s407_s18 = scalar_lea.sflag [#allocation3], %s406_s11 }
 0x1d6   : > { %p555_p3 = pnand %p558_p2, %p768_p8 }
 0x1d8   : > { %671 = dma.done.wait (!%p555_p3), %s407_s18, 128  }
 0x1d9   : > { %673 = vsyncadd (!%p555_p3), %s407_s18, 4294967168  ;;  %s16_s17 = sadd.s32 1, %s696_s17   ;;  %s845_s12 = smov %s680_s13 }
 0x1da   : > { %p13_p5 = scmp.ge.s32.totalorder %s16_s17, 6   ;;  %s846_s13 = smov %s684_s14 }
 0x1db   : > { %s847_s14 = smov %s774_s25  ;;  %s848_s15 = smov %s692_s16 }
 0x1dc   : > { %s849_s16 = smov %s851_s20  ;;  %15 = sbr.rel (!%p13_p5) target bundleno = 4 (0x4), region = 73 }
 0x1e3   :  { %412 = vsyncpa [#allocation3], 1 }
 0x1e4   :  { %414 = vsyncpa [#allocation3 + $0x1], 1 }

</bundles_post_ra>
